<compile_context>
chip_gen: v7x
topology: tpu7x:2x2x1
jax: 0.10.0
libtpu: 0.0.40
codegen_flags: <defaults>
</compile_context>

<pallas_src>
import functools
import numpy as np

import jax
import jax.numpy as jnp
from jax.experimental import pallas as pl
from jax.experimental.pallas import tpu as pltpu


# ----------------------------------------------------------------------------
# small helpers
# ----------------------------------------------------------------------------
def _round_up(x, m):
    return (x + m - 1) // m * m


def _divisors(n):
    ds = set()
    i = 1
    while i * i <= n:
        if n % i == 0:
            ds.add(i)
            ds.add(n // i)
        i += 1
    return sorted(ds, reverse=True)


def _largest_divisor_tile(n, align, cap, fits):
    """Largest divisor t of n with t % align == 0, t <= cap and fits(t)."""
    for t in _divisors(n):
        if t > cap:
            continue
        if align > 1 and t % align != 0:
            continue
        if fits(t):
            return t
    return None


@functools.lru_cache(maxsize=None)
def _vmem_limit_bytes():
    """Per-generation VMEM limit: ~48 MiB on v7x (64 MiB phys), ~100 MiB on
    v5e/v6e (128 MiB phys)."""
    cap = 64 * 1024 * 1024
    try:
        info = pltpu.get_tpu_info()
        c = getattr(info, "vmem_capacity_bytes", None)
        if c:
            cap = int(c)
    except Exception:
        pass
    cap = max(cap, 48 * 1024 * 1024)
    return min(int(cap * 0.8), cap - 16 * 1024 * 1024, 128 * 1024 * 1024)


def _vmem_budget():
    # headroom for Mosaic internal scratch / small uncounted operands
    return int(_vmem_limit_bytes() * 0.85)


def _apply_act(y, activation):
    if activation == "relu":
        return jnp.maximum(y, 0.0)
    if activation == "gelu":              # exact (erf) GELU, matching nn.GELU()
        return 0.5 * y * (1.0 + jax.lax.erf(y * 0.7071067811865476))
    return y


# ----------------------------------------------------------------------------
# fused matmul: out = act((LN(a) @ b) * scale + shift) [+ residual]
#   * bf16 MXU operands, f32 accumulation
#   * b (weight) held fully resident (constant block index -> fetched once)
#   * optional per-row LayerNorm prologue (requires full K in the block)
# ----------------------------------------------------------------------------
def _matmul_kernel_single(*refs, activation, has_residual, has_ln, ln_eps):
    a_ref, b_ref, scale_ref, shift_ref = refs[:4]
    idx = 4
    if has_ln:
        lnw_ref, lnb_ref = refs[idx], refs[idx + 1]
        idx += 2
    if has_residual:
        res_ref = refs[idx]
        idx += 1
    o_ref = refs[idx]

    a = a_ref[...]
    if has_ln:
        xf = a.astype(jnp.float32)
        mean = jnp.mean(xf, axis=-1, keepdims=True)
        var = jnp.mean(jnp.square(xf - mean), axis=-1, keepdims=True)
        xf = (xf - mean) * jax.lax.rsqrt(var + ln_eps)
        a = (xf * lnw_ref[...] + lnb_ref[...]).astype(jnp.bfloat16)
    y = jnp.dot(a, b_ref[...], preferred_element_type=jnp.float32)
    y = y * scale_ref[...] + shift_ref[...]
    y = _apply_act(y, activation)
    if has_residual:
        y = y + res_ref[...].astype(jnp.float32)
    o_ref[...] = y.astype(o_ref.dtype)


def _matmul_kernel_multi(*refs, activation, has_residual):
    if has_residual:
        a_ref, b_ref, scale_ref, shift_ref, res_ref, o_ref, acc_ref = refs
    else:
        a_ref, b_ref, scale_ref, shift_ref, o_ref, acc_ref = refs

    @pl.when(pl.program_id(2) == 0)
    def _():
        acc_ref[...] = jnp.zeros_like(acc_ref)

    acc_ref[...] += jnp.dot(a_ref[...], b_ref[...],
                            preferred_element_type=jnp.float32)

    @pl.when(pl.program_id(2) == pl.num_programs(2) - 1)
    def _():
        y = acc_ref[...] * scale_ref[...] + shift_ref[...]
        y = _apply_act(y, activation)
        if has_residual:
            y = y + res_ref[...].astype(jnp.float32)
        o_ref[...] = y.astype(o_ref.dtype)


def matmul_act(a, b, scale=None, shift=None, activation="none",
               residual=None, ln=None, out_dtype=jnp.float32):
    """out = act((LN(a) @ b) * scale + shift) [+ residual], per-out-col affine."""
    M, K = a.shape
    K2, N = b.shape
    assert K == K2
    has_residual = residual is not None
    has_ln = ln is not None
    out_bytes = jnp.dtype(out_dtype).itemsize
    budget = _vmem_budget()

    a = a.astype(jnp.bfloat16)
    b = b.astype(jnp.bfloat16)

    Np = _round_up(N, 128)                   # lane-dense output columns
    Mp = _round_up(M, 8)
    multi_k = K > 4096                       # never triggers in this network
    assert not (multi_k and has_ln)
    tk = 512 if multi_k else K
    Kp = _round_up(K, tk) if multi_k else K

    if Np != N:
        b = jnp.pad(b, ((0, 0), (0, Np - N)))
    scale = jnp.ones((N,), jnp.float32) if scale is None else scale.astype(jnp.float32)
    shift = jnp.zeros((N,), jnp.float32) if shift is None else shift.astype(jnp.float32)
    if Np != N:
        scale = jnp.pad(scale, (0, Np - N), constant_values=1.0)
        shift = jnp.pad(shift, (0, Np - N))
    scale = scale.reshape(1, Np)
    shift = shift.reshape(1, Np)

    # budget-aware tiles: N tile as large as possible (usually the full Np so
    # the weight is resident), then the M tile.
    def fits_n(tn_):
        return (2 * tk * tn_ * 2 + 2 * 8 * Kp * 2 + 2 * 8 * tn_ * out_bytes) <= budget
    tn = _largest_divisor_tile(Np, 128, Np, fits_n) or 128

    def fits_m(tm_):
        need = (2 * tm_ * Kp * 2 + 2 * tk * tn * 2
                + 2 * tm_ * tn * out_bytes + tm_ * tn * 4)
        if has_residual:
            need += 2 * tm_ * tn * 4
        if multi_k:
            need += tm_ * tn * 4
        return need <= budget
    tm = _largest_divisor_tile(Mp, 8, 1024, fits_m) or 8

    if Mp != M or Kp != K:
        a = jnp.pad(a, ((0, Mp - M), (0, Kp - K)))
    if Kp != K:
        b = jnp.pad(b, ((0, Kp - K), (0, 0)))

    if not multi_k:
        grid = (Mp // tm, Np // tn)
        inputs = [a, b, scale, shift]
        in_specs = [
            pl.BlockSpec((tm, K), lambda i, j: (i, 0)),
            pl.BlockSpec((K, tn), lambda i, j: (0, j)),   # constant when tn==Np
            pl.BlockSpec((1, tn), lambda i, j: (0, j)),
            pl.BlockSpec((1, tn), lambda i, j: (0, j)),
        ]
        ln_eps = 0.0
        if has_ln:
            ln_w, ln_b, ln_eps = ln
            inputs += [ln_w.reshape(1, K).astype(jnp.float32),
                       ln_b.reshape(1, K).astype(jnp.float32)]
            in_specs += [pl.BlockSpec((1, K), lambda i, j: (0, 0)),
                         pl.BlockSpec((1, K), lambda i, j: (0, 0))]
        if has_residual:
            r = residual.astype(jnp.float32)
            if Mp != M or Np != N:
                r = jnp.pad(r, ((0, Mp - M), (0, Np - N)))
            inputs.append(r)
            in_specs.append(pl.BlockSpec((tm, tn), lambda i, j: (i, j)))
        kernel = functools.partial(_matmul_kernel_single, activation=activation,
                                   has_residual=has_residual, has_ln=has_ln,
                                   ln_eps=ln_eps)
        scratch = []
        dims = ("parallel", "parallel")
        out_spec = pl.BlockSpec((tm, tn), lambda i, j: (i, j))
    else:
        grid = (Mp // tm, Np // tn, Kp // tk)
        inputs = [a, b, scale, shift]
        in_specs = [
            pl.BlockSpec((tm, tk), lambda i, j, k: (i, k)),
            pl.BlockSpec((tk, tn), lambda i, j, k: (k, j)),
            pl.BlockSpec((1, tn), lambda i, j, k: (0, j)),
            pl.BlockSpec((1, tn), lambda i, j, k: (0, j)),
        ]
        if has_residual:
            r = residual.astype(jnp.float32)
            if Mp != M or Np != N:
                r = jnp.pad(r, ((0, Mp - M), (0, Np - N)))
            inputs.append(r)
            in_specs.append(pl.BlockSpec((tm, tn), lambda i, j, k: (i, j)))
        kernel = functools.partial(_matmul_kernel_multi, activation=activation,
                                   has_residual=has_residual)
        scratch = [pltpu.VMEM((tm, tn), jnp.float32)]
        dims = ("parallel", "parallel", "arbitrary")
        out_spec = pl.BlockSpec((tm, tn), lambda i, j, k: (i, j))

    cost = pl.CostEstimate(
        flops=2 * M * N * K, transcendentals=0,
        bytes_accessed=(M * K + K * N) * 2 + M * N * out_bytes)

    out = pl.pallas_call(
        kernel,
        out_shape=jax.ShapeDtypeStruct((Mp, Np), out_dtype),
        grid_spec=pltpu.PrefetchScalarGridSpec(
            num_scalar_prefetch=0, grid=grid,
            in_specs=in_specs, out_specs=out_spec,
            scratch_shapes=scratch),
        compiler_params=pltpu.CompilerParams(
            dimension_semantics=dims, vmem_limit_bytes=_vmem_limit_bytes()),
        cost_estimate=cost,
    )(*inputs)
    if Mp != M or Np != N:
        out = out[:M, :N]
    return out


# ----------------------------------------------------------------------------
# LayerNorm over the channel (last) axis of a (M, C) array
# ----------------------------------------------------------------------------
def _layernorm_kernel(x_ref, w_ref, b_ref, o_ref, *, eps):
    x = x_ref[...].astype(jnp.float32)
    mean = jnp.mean(x, axis=-1, keepdims=True)
    var = jnp.mean(jnp.square(x - mean), axis=-1, keepdims=True)
    y = (x - mean) * jax.lax.rsqrt(var + eps)
    o_ref[...] = (y * w_ref[...] + b_ref[...]).astype(o_ref.dtype)


def layernorm(x2d, weight, bias, eps=1e-6, out_dtype=jnp.float32):
    M, C = x2d.shape
    in_bytes = x2d.dtype.itemsize
    out_bytes = jnp.dtype(out_dtype).itemsize
    budget = _vmem_budget()
    Mp = _round_up(M, 8)

    def fits(tm):
        return (2 * tm * C * (in_bytes + out_bytes) + 2 * tm * C * 4) <= budget
    tm = _largest_divisor_tile(Mp, 8, 2048, fits) or 8
    if Mp != M:
        x2d = jnp.pad(x2d, ((0, Mp - M), (0, 0)))
    w = weight.reshape(1, C).astype(jnp.float32)
    b = bias.reshape(1, C).astype(jnp.float32)
    out = pl.pallas_call(
        functools.partial(_layernorm_kernel, eps=eps),
        out_shape=jax.ShapeDtypeStruct((Mp, C), out_dtype),
        grid_spec=pltpu.PrefetchScalarGridSpec(
            num_scalar_prefetch=0,
            grid=(Mp // tm,),
            in_specs=[pl.BlockSpec((tm, C), lambda i: (i, 0)),
                      pl.BlockSpec((1, C), lambda i: (0, 0)),
                      pl.BlockSpec((1, C), lambda i: (0, 0))],
            out_specs=pl.BlockSpec((tm, C), lambda i: (i, 0))),
        compiler_params=pltpu.CompilerParams(
            dimension_semantics=("parallel",),
            vmem_limit_bytes=_vmem_limit_bytes()),
    )(x2d, w, b)
    return out[:M] if Mp != M else out


# ----------------------------------------------------------------------------
# depthwise 7x7 conv (padding 3), row-group tiled with a 3-row halo.
# bf16 storage, f32 accumulation.  Encoder tensors are small so the whole
# padded image normally fits one block (no halo duplication).
# ----------------------------------------------------------------------------
def _dwconv_kernel(xg_ref, w_ref, b_ref, o_ref, *, tr, out_w):
    c = o_ref.shape[-1]
    acc = jnp.zeros((tr, out_w, c), jnp.float32)
    for kw in range(7):
        xs = xg_ref[0, :, kw:kw + out_w, :].astype(jnp.float32)
        for kh in range(7):
            acc = acc + xs[kh:kh + tr] * w_ref[kh * 7 + kw]
    o_ref[0] = (acc + b_ref[...]).astype(o_ref.dtype)


def dwconv7x7(x, weight, bias, out_dtype=jnp.bfloat16):
    """Depthwise 7x7, padding 3.  x: (B,H,W,C) NHWC; weight: (7,7,C); bias: (C,)."""
    B, H, W, C = x.shape
    Wp = W + 6
    budget = _vmem_budget()

    def fits(tr):
        return (2 * (tr + 6) * Wp * C * 2 + 49 * C * 8 + 2 * C * 4
                + 2 * tr * W * C * 2 + 2 * tr * W * C * 4) <= budget
    tr = _largest_divisor_tile(H, 1, min(H, 256), fits) or 1
    G = H // tr

    xp = jnp.pad(x.astype(jnp.bfloat16), ((0, 0), (3, 3), (3, 3), (0, 0)))
    if G == 1:
        xg = xp.reshape(B, 1, H + 6, Wp, C)
    else:
        # TODO(synk): rare fallback; a manual-DMA halo window (as in conv3x3)
        # would avoid this gather for very large encoder inputs.
        idx = (jnp.arange(G) * tr)[:, None] + jnp.arange(tr + 6)[None, :]
        xg = xp[:, idx]
    xg = xg.reshape(B * G, tr + 6, Wp, C)
    w = weight.reshape(49, C).astype(jnp.float32)
    b = bias.reshape(1, C).astype(jnp.float32)
    out = pl.pallas_call(
        functools.partial(_dwconv_kernel, tr=tr, out_w=W),
        out_shape=jax.ShapeDtypeStruct((B * G, tr, W, C), out_dtype),
        grid_spec=pltpu.PrefetchScalarGridSpec(
            num_scalar_prefetch=0,
            grid=(B * G,),
            in_specs=[pl.BlockSpec((1, tr + 6, Wp, C), lambda g: (g, 0, 0, 0)),
                      pl.BlockSpec((49, C), lambda g: (0, 0)),
                      pl.BlockSpec((1, C), lambda g: (0, 0))],
            out_specs=pl.BlockSpec((1, tr, W, C), lambda g: (g, 0, 0, 0))),
        compiler_params=pltpu.CompilerParams(
            dimension_semantics=("parallel",),
            vmem_limit_bytes=_vmem_limit_bytes()),
    )(xg, w, b)
    return out.reshape(B, H, W, C)


# ----------------------------------------------------------------------------
# 3x3 conv (padding 1) + fused per-channel affine (BatchNorm) + optional ReLU.
#   * accepts a LIST of NHWC inputs (fused channel concat)
#   * padded inputs stay in HBM (pl.ANY); overlapping (tr+2)-row windows are
#     manually DMA'd with double buffering; weights are DMA'd once into
#     persistent VMEM scratch (resident across the whole grid)
# ----------------------------------------------------------------------------
def _conv3x3_kernel(*refs, n_in, relu):
    x_hbm = refs[0:n_in]
    w_hbm = refs[n_in:2 * n_in]
    scale_ref = refs[2 * n_in]
    shift_ref = refs[2 * n_in + 1]
    o_ref = refs[2 * n_in + 2]
    scr = refs[2 * n_in + 3:]
    xbufs = scr[0:n_in]
    wbufs = scr[n_in:2 * n_in]
    in_sem = scr[2 * n_in]
    w_sem = scr[2 * n_in + 1]

    tr = o_ref.shape[1]
    out_w = o_ref.shape[2]
    coutp = o_ref.shape[3]

    b = pl.program_id(0)
    g = pl.program_id(1)
    nb = pl.num_programs(0)
    G = pl.num_programs(1)
    flat = b * G + g
    slot = flat & 1
    nsteps = nb * G

    def window_copy(i, bb, gg, sl):
        return pltpu.make_async_copy(
            x_hbm[i].at[bb, pl.ds(gg * tr, tr + 2)],
            xbufs[i].at[sl], in_sem.at[i, sl])

    # first step: load resident weights and prime slot 0
    @pl.when(jnp.logical_and(b == 0, g == 0))
    def _():
        for i in range(n_in):
            pltpu.make_async_copy(w_hbm[i], wbufs[i], w_sem.at[i]).start()
            window_copy(i, b, g, slot).start()
        for i in range(n_in):
            pltpu.make_async_copy(w_hbm[i], wbufs[i], w_sem.at[i]).wait()

    # wait for this step's input windows
    for i in range(n_in):
        window_copy(i, b, g, slot).wait()

    # prefetch the next step's windows into the other slot
    @pl.when(flat + 1 < nsteps)
    def _():
        ng = jnp.where(g + 1 < G, g + 1, 0)
        nxb = jnp.where(g + 1 < G, b, b + 1)
        for i in range(n_in):
            window_copy(i, nxb, ng, 1 - slot).start()

    # 9 taps x n_in inputs, accumulated into a local f32 value (single store)
    acc = jnp.zeros((tr * out_w, coutp), jnp.float32)
    for i in range(n_in):
        xw = xbufs[i][slot]                         # (tr+2, W+2, cin) bf16
        for kw in range(3):
            xs = xw[:, kw:kw + out_w, :]
            for kh in range(3):
                a = xs[kh:kh + tr].reshape(tr * out_w, -1)
                acc = acc + jnp.dot(a, wbufs[i][kh * 3 + kw],
                                    preferred_element_type=jnp.float32)
    y = acc * scale_ref[...] + shift_ref[...]
    if relu:
        y = jnp.maximum(y, 0.0)
    o_ref[0] = y.reshape(tr, out_w, coutp).astype(o_ref.dtype)


def conv3x3_bn_act(xs, w, true_cins, scale, shift, *, relu, out_dtype):
    """3x3 same-padding conv over the channel-concatenation of `xs` (NHWC),
    with fused affine (+ReLU).  w: (3,3,sum(true_cins),Cout).  xs[i] may carry
    zero-padded extra channels beyond true_cins[i] (matched by zero weights).
    Output channels are zero-padded up to a multiple of 128 (lane dense)."""
    assert sum(true_cins) == w.shape[2]
    B, H, W, _ = xs[0].shape
    n_in = len(xs)
    Cout = w.shape[-1]
    Coutp = max(128, _round_up(Cout, 128))
    cins = [int(x.shape[-1]) for x in xs]

    # weight slices per input, channel-padded to match the (padded) inputs
    w_slices = []
    off = 0
    for i in range(n_in):
        tc = true_cins[i]
        wi = w[:, :, off:off + tc, :]
        off += tc
        if cins[i] > tc or Coutp > Cout:
            wi = jnp.pad(wi, ((0, 0), (0, 0), (0, cins[i] - tc), (0, Coutp - Cout)))
        w_slices.append(wi.astype(jnp.bfloat16).reshape(9, cins[i], Coutp))

    if scale is None:
        scale = jnp.ones((Cout,), jnp.float32)
    if shift is None:
        shift = jnp.zeros((Cout,), jnp.float32)
    scale = jnp.pad(scale.astype(jnp.float32), (0, Coutp - Cout),
                    constant_values=1.0).reshape(1, Coutp)
    shift = jnp.pad(shift.astype(jnp.float32), (0, Coutp - Cout)).reshape(1, Coutp)

    # padded inputs stay in HBM; only overlapping windows are DMA'd
    xps = [jnp.pad(x.astype(jnp.bfloat16), ((0, 0), (1, 1), (1, 1), (0, 0)))
           for x in xs]
    Wp = W + 2
    out_bytes = jnp.dtype(out_dtype).itemsize
    budget = _vmem_budget()
    wvmem = sum(9 * c * Coutp * 2 for c in cins)

    def fits(tr):
        return (sum(2 * (tr + 2) * Wp * c * 2 for c in cins)   # window buffers
                + wvmem                                        # resident weights
                + 2 * tr * W * Coutp * out_bytes               # output blocks
                + 2 * tr * W * Coutp * 4) <= budget            # acc/epilogue f32
    tr = _largest_divisor_tile(H, 1, min(H, 64), fits) or 1
    G = H // tr

    cost = pl.CostEstimate(
        flops=2 * 9 * B * H * W * sum(cins) * Coutp, transcendentals=0,
        bytes_accessed=sum(int(xp.size) * 2 for xp in xps) + wvmem
                       + B * H * W * Coutp * out_bytes)

    in_specs = ([pl.BlockSpec(memory_space=pl.ANY)] * (2 * n_in)
                + [pl.BlockSpec((1, Coutp), lambda b, g: (0, 0)),
                   pl.BlockSpec((1, Coutp), lambda b, g: (0, 0))])
    scratch = ([pltpu.VMEM((2, tr + 2, Wp, c), jnp.bfloat16) for c in cins]
               + [pltpu.VMEM((9, c, Coutp), jnp.bfloat16) for c in cins]
               + [pltpu.SemaphoreType.DMA((n_in, 2)),
                  pltpu.SemaphoreType.DMA((n_in,))])

    out = pl.pallas_call(
        functools.partial(_conv3x3_kernel, n_in=n_in, relu=relu),
        out_shape=jax.ShapeDtypeStruct((B, H, W, Coutp), out_dtype),
        grid_spec=pltpu.PrefetchScalarGridSpec(
            num_scalar_prefetch=0,
            grid=(B, G),
            in_specs=in_specs,
            out_specs=pl.BlockSpec((1, tr, W, Coutp), lambda b, g: (b, g, 0, 0)),
            scratch_shapes=scratch),
        compiler_params=pltpu.CompilerParams(
            dimension_semantics=("arbitrary", "arbitrary"),
            vmem_limit_bytes=_vmem_limit_bytes()),
        cost_estimate=cost,
    )(*xps, *w_slices, scale, shift)
    return out


# ----------------------------------------------------------------------------
# lane-dense batched small matmul: out[g] = R @ x[g]   (bilinear resize steps)
# ----------------------------------------------------------------------------
def _interp_kernel(r_ref, x_ref, o_ref):
    o_ref[0] = jnp.dot(r_ref[...], x_ref[0],
                       preferred_element_type=jnp.float32).astype(o_ref.dtype)


def batched_interp_matmul(r, x, out_dtype=jnp.bfloat16):
    """r: (Mo, K); x: (G, K, N) -> out: (G, Mo, N).  N (channels) stays on lanes."""
    G, K, N = x.shape
    Mo = r.shape[0]
    Kp = max(8, _round_up(K, 8))
    if Kp != K:
        r = jnp.pad(r, ((0, 0), (0, Kp - K)))
        x = jnp.pad(x, ((0, 0), (0, Kp - K), (0, 0)))
    r = r.astype(jnp.bfloat16)
    x = x.astype(jnp.bfloat16)
    out_bytes = jnp.dtype(out_dtype).itemsize
    budget = _vmem_budget()

    def fits(tn_):
        return (Mo * Kp * 2 + 2 * Kp * tn_ * 2 + 2 * Mo * tn_ * out_bytes
                + Mo * tn_ * 4) <= budget
    if N % 128 == 0:
        tn = _largest_divisor_tile(N, 128, N, fits) or 128
    else:
        tn = N                      # small ragged channel counts (96, 192)

    out = pl.pallas_call(
        _interp_kernel,
        out_shape=jax.ShapeDtypeStruct((G, Mo, N), out_dtype),
        grid_spec=pltpu.PrefetchScalarGridSpec(
            num_scalar_prefetch=0,
            grid=(G, N // tn),
            in_specs=[pl.BlockSpec((Mo, Kp), lambda g, j: (0, 0)),
                      pl.BlockSpec((1, Kp, tn), lambda g, j: (g, 0, j))],
            out_specs=pl.BlockSpec((1, Mo, tn), lambda g, j: (g, 0, j))),
        compiler_params=pltpu.CompilerParams(
            dimension_semantics=("parallel", "parallel"),
            vmem_limit_bytes=_vmem_limit_bytes()),
    )(r, x)
    return out


# ----------------------------------------------------------------------------
# glue helpers (pure JAX / numpy)
# ----------------------------------------------------------------------------
def _patchify(x, k):
    """Non-overlapping kxk patches (stride k), flattened in (kh, kw, c) order."""
    B, H, W, C = x.shape
    x = x.reshape(B, H // k, k, W // k, k, C)
    x = x.transpose(0, 1, 3, 2, 4, 5)            # (B, H/k, W/k, k, k, C)
    return x.reshape(B * (H // k) * (W // k), k * k * C), (B, H // k, W // k)


def _resize_matrix(in_size, out_size):
    """Bilinear (align_corners=False) 1-D interpolation matrix, PyTorch semantics."""
    scale = in_size / out_size
    dst = np.arange(out_size)
    src = (dst + 0.5) * scale - 0.5
    src = np.clip(src, 0.0, None)
    i0 = np.minimum(np.floor(src).astype(np.int64), in_size - 1)
    i1 = np.minimum(i0 + 1, in_size - 1)
    l1 = src - i0
    l0 = 1.0 - l1
    R = np.zeros((out_size, in_size), np.float32)
    R[np.arange(out_size), i0] += l0.astype(np.float32)
    R[np.arange(out_size), i1] += l1.astype(np.float32)
    return R


def upsample_bilinear(s, Ho, Wo):
    """Separable bilinear resize, channels stay on the lane axis (no transposes)."""
    Bc, Hi, Wi, Ci = s.shape
    Rw = jnp.asarray(_resize_matrix(Wi, Wo))     # (Wo, Wi)
    Rh = jnp.asarray(_resize_matrix(Hi, Ho))     # (Ho, Hi)
    t = batched_interp_matmul(Rw, s.reshape(Bc * Hi, Wi, Ci))   # (B*Hi, Wo, Ci)
    t = t.reshape(Bc, Hi, Wo * Ci)
    t = batched_interp_matmul(Rh, t)                            # (B, Ho, Wo*Ci)
    return t.reshape(Bc, Ho, Wo, Ci)


# ----------------------------------------------------------------------------
# Parameter init (deterministic, synthetic) — shapes mirror the PyTorch module
# ----------------------------------------------------------------------------
DIMS = (96, 192, 384, 768)
DEPTHS = (3, 3, 9, 3)


def init_convrecon_params(key, n_channels, layer_scale_init_value=1.0):
    keys = list(jax.random.split(key, 256))
    kit = iter(keys)

    def nrm(shape):
        return 0.02 * jax.random.normal(next(kit), shape, jnp.float32)

    p = {}
    p['stem_w'] = nrm((4, 4, n_channels, DIMS[0]))
    p['stem_b'] = jnp.zeros((DIMS[0],), jnp.float32)
    p['stem_ln_w'] = jnp.ones((DIMS[0],), jnp.float32)
    p['stem_ln_b'] = jnp.zeros((DIMS[0],), jnp.float32)
    for i in range(3):
        p[f'ds{i}_ln_w'] = jnp.ones((DIMS[i],), jnp.float32)
        p[f'ds{i}_ln_b'] = jnp.zeros((DIMS[i],), jnp.float32)
        p[f'ds{i}_w'] = nrm((2, 2, DIMS[i], DIMS[i + 1]))
        p[f'ds{i}_b'] = jnp.zeros((DIMS[i + 1],), jnp.float32)
    blocks = []
    for i in range(4):
        stage = []
        for _ in range(DEPTHS[i]):
            d = DIMS[i]
            stage.append(dict(
                dw_w=nrm((7, 7, d)), dw_b=jnp.zeros((d,), jnp.float32),
                ln_w=jnp.ones((d,), jnp.float32), ln_b=jnp.zeros((d,), jnp.float32),
                pw1_w=nrm((d, 4 * d)), pw1_b=jnp.zeros((4 * d,), jnp.float32),
                pw2_w=nrm((4 * d, d)), pw2_b=jnp.zeros((d,), jnp.float32),
                gamma=layer_scale_init_value * jnp.ones((d,), jnp.float32),
            ))
        blocks.append(stage)
    p['blocks'] = blocks
    for i in range(4):
        p[f'norm{i}_w'] = jnp.ones((DIMS[i],), jnp.float32)
        p[f'norm{i}_b'] = jnp.zeros((DIMS[i],), jnp.float32)
    chans = [sum(DIMS), 512, 256, 128, 64, n_channels]
    fnn = []
    for l in range(5):
        layer = dict(w=nrm((3, 3, chans[l], chans[l + 1])))
        if l < 4:  # BatchNorm2d params (eval-mode running stats)
            layer.update(
                bn_w=jnp.ones((chans[l + 1],), jnp.float32),
                bn_b=jnp.zeros((chans[l + 1],), jnp.float32),
                bn_rm=jnp.zeros((chans[l + 1],), jnp.float32),
                bn_rv=jnp.ones((chans[l + 1],), jnp.float32),
            )
        fnn.append(layer)
    p['fnn'] = fnn
    return p


# ----------------------------------------------------------------------------
# Forward pass
# ----------------------------------------------------------------------------
def convrecon_forward(params, x_nchw, *, original_height=16, original_width=16,
                      eps_ln=1e-6, eps_bn=1e-5):
    # boundary layout: NCHW (PyTorch); internal layout: NHWC.
    n_ch = x_nchw.shape[1]
    x = jnp.transpose(x_nchw, (0, 2, 3, 1)).astype(jnp.float32)
    B = x.shape[0]

    # ----------------------- ConvNeXt-tiny encoder ------------------------
    outs = []
    for i in range(4):
        if i == 0:
            a, (_, Hn, Wn) = _patchify(x, 4)
            y = matmul_act(a, params['stem_w'].reshape(-1, DIMS[0]),
                           shift=params['stem_b'], out_dtype=jnp.float32)
            y = layernorm(y, params['stem_ln_w'], params['stem_ln_b'], eps=eps_ln,
                          out_dtype=jnp.float32)
            x = y.reshape(B, Hn, Wn, DIMS[0])
        else:
            Bc, H, W, C = x.shape
            y = layernorm(x.reshape(-1, C), params[f'ds{i-1}_ln_w'],
                          params[f'ds{i-1}_ln_b'], eps=eps_ln,
                          out_dtype=jnp.bfloat16)
            a, (_, Hn, Wn) = _patchify(y.reshape(Bc, H, W, C), 2)
            y = matmul_act(a, params[f'ds{i-1}_w'].reshape(-1, DIMS[i]),
                           shift=params[f'ds{i-1}_b'], out_dtype=jnp.float32)
            x = y.reshape(B, Hn, Wn, DIMS[i])

        for blk in params['blocks'][i]:
            inp = x                                      # residual stream (f32)
            Bc, H, W, C = x.shape
            h = dwconv7x7(x, blk['dw_w'], blk['dw_b'])   # bf16 out
            # LayerNorm fused into the pw1 prologue; GELU in the epilogue.
            h2 = matmul_act(h.reshape(-1, C), blk['pw1_w'], shift=blk['pw1_b'],
                            activation='gelu',
                            ln=(blk['ln_w'], blk['ln_b'], eps_ln),
                            out_dtype=jnp.bfloat16)
            # gamma * (h @ W2 + b2) + residual, fused into the pw2 epilogue
            # (drop_path == identity in eval mode).
            x = matmul_act(h2, blk['pw2_w'], scale=blk['gamma'],
                           shift=blk['pw2_b'] * blk['gamma'],
                           residual=inp.reshape(-1, C),
                           out_dtype=jnp.float32).reshape(Bc, H, W, C)

        Bc, H, W, C = x.shape
        s = layernorm(x.reshape(-1, C), params[f'norm{i}_w'], params[f'norm{i}_b'],
                      eps=eps_ln, out_dtype=jnp.bfloat16)
        outs.append(s.reshape(Bc, H, W, C))

    # ------------------------------ Decoder -------------------------------
    Ho, Wo = original_height, original_width
    ups = [upsample_bilinear(s, Ho, Wo) for s in outs]   # 4 x (B,Ho,Wo,Ci) bf16

    # ------------------------------- FNN -----------------------------------
    # The channel concat is fused into the first conv (4 inputs, 4 weight
    # slices); Conv(no bias) -> eval BatchNorm -> ReLU fused per layer.
    xs = ups
    true_cins = list(DIMS)
    y = None
    for l, layer in enumerate(params['fnn']):
        if l < 4:
            scale = layer['bn_w'] * jax.lax.rsqrt(layer['bn_rv'] + eps_bn)
            shift = layer['bn_b'] - layer['bn_rm'] * scale
            y = conv3x3_bn_act(xs, layer['w'], true_cins, scale, shift,
                               relu=True, out_dtype=jnp.bfloat16)
        else:      # final Conv(no bias), no activation
            y = conv3x3_bn_act(xs, layer['w'], true_cins, None, None,
                               relu=False, out_dtype=jnp.float32)
        xs = [y]
        true_cins = [layer['w'].shape[-1]]

    s = y[..., :n_ch]                        # drop the lane padding (128 -> 3)
    return jnp.transpose(s, (0, 3, 1, 2))    # back to NCHW


# ----------------------------------------------------------------------------
if __name__ == "__main__":
    key = jax.random.PRNGKey(0)
    pkey, xkey = jax.random.split(key)

    n_channels = 3
    params = init_convrecon_params(pkey, n_channels)

    # Small NCHW input (the PyTorch default decoder target is 210x380; we use
    # 16x16 here to keep the demo small — the kernel path is identical).
    x = jax.random.normal(xkey, (2, n_channels, 32, 32), jnp.float32)

    out = convrecon_forward(params, x, original_height=16, original_width=16)
    out = jax.block_until_ready(out)
    assert out.shape == (2, n_channels, 16, 16)
    assert bool(jnp.all(jnp.isfinite(out)))
    print("KERNEL_OK")
</pallas_src>

<mosaic_0001>
module attributes {stable_mosaic.version = 11 : i64} {
  func.func @_matmul_kernel_single(%arg0: i32, %arg1: i32, %arg2: memref<128x48xbf16, #tpu.memory_space<vmem>>, %arg3: memref<48x128xbf16, #tpu.memory_space<vmem>>, %arg4: memref<1x128xf32, #tpu.memory_space<vmem>>, %arg5: memref<1x128xf32, #tpu.memory_space<vmem>>, %arg6: memref<128x128xf32, #tpu.memory_space<vmem>>) attributes {dimension_semantics = [#tpu.dimension_semantics<parallel>, #tpu.dimension_semantics<parallel>], iteration_bounds = array<i64: 1, 1>, scalar_prefetch = 0 : i64, scratch_operands = 0 : i64, tpu.core_type = #tpu.core_type<tc>, window_params = [{transform_indices = @transform_0, window_bounds = array<i64: 128, 48>}, {transform_indices = @transform_1, window_bounds = array<i64: 48, 128>}, {transform_indices = @transform_2, window_bounds = array<i64: 1, 128>}, {transform_indices = @transform_3, window_bounds = array<i64: 1, 128>}, {transform_indices = @transform_4, window_bounds = array<i64: 128, 128>}]} {
    %c0 = arith.constant 0 : index
    %c0_0 = arith.constant 0 : index
    %0 = vector.load %arg2[%c0, %c0_0] : memref<128x48xbf16, #tpu.memory_space<vmem>>, vector<128x48xbf16>
    %c0_1 = arith.constant 0 : index
    %c0_2 = arith.constant 0 : index
    %1 = vector.load %arg3[%c0_1, %c0_2] : memref<48x128xbf16, #tpu.memory_space<vmem>>, vector<48x128xbf16>
    %cst = arith.constant dense<0.000000e+00> : vector<128x128xf32>
    %2 = tpu.matmul %0, %1, %cst {dimension_numbers = #tpu.dot_dimension_numbers<[1], [0], [0], [1], [0, 0, 1, 1], [], []>} : vector<128x48xbf16>, vector<48x128xbf16>, vector<128x128xf32> -> vector<128x128xf32>
    %c0_3 = arith.constant 0 : index
    %c0_4 = arith.constant 0 : index
    %3 = vector.load %arg4[%c0_3, %c0_4] : memref<1x128xf32, #tpu.memory_space<vmem>>, vector<1x128xf32>
    %4 = vector.broadcast %3 : vector<1x128xf32> to vector<128x128xf32>
    %5 = arith.mulf %2, %4 : vector<128x128xf32>
    %c0_5 = arith.constant 0 : index
    %c0_6 = arith.constant 0 : index
    %6 = vector.load %arg5[%c0_5, %c0_6] : memref<1x128xf32, #tpu.memory_space<vmem>>, vector<1x128xf32>
    %7 = vector.broadcast %6 : vector<1x128xf32> to vector<128x128xf32>
    %8 = arith.addf %5, %7 : vector<128x128xf32>
    %c0_7 = arith.constant 0 : index
    %c0_8 = arith.constant 0 : index
    %9 = vector.load %arg6[%c0_7, %c0_8] : memref<128x128xf32, #tpu.memory_space<vmem>>, vector<128x128xf32>
    tpu.vector_store %arg6[%c0_7, %c0_8], %8 {strides = array<i32>} : memref<128x128xf32, #tpu.memory_space<vmem>>, vector<128x128xf32>,
    return
  }
  func.func @transform_0(%arg0: i32, %arg1: i32) -> (i32, i32) {
    %c0_i32 = arith.constant 0 : i32
    %c0_i32_0 = arith.constant 0 : i32
    return %arg0, %c0_i32 : i32, i32
  }
  func.func @transform_1(%arg0: i32, %arg1: i32) -> (i32, i32) {
    %c0_i32 = arith.constant 0 : i32
    %c0_i32_0 = arith.constant 0 : i32
    return %c0_i32, %arg1 : i32, i32
  }
  func.func @transform_2(%arg0: i32, %arg1: i32) -> (i32, i32) {
    %c0_i32 = arith.constant 0 : i32
    %c0_i32_0 = arith.constant 0 : i32
    return %c0_i32, %arg1 : i32, i32
  }
  func.func @transform_3(%arg0: i32, %arg1: i32) -> (i32, i32) {
    %c0_i32 = arith.constant 0 : i32
    %c0_i32_0 = arith.constant 0 : i32
    return %c0_i32, %arg1 : i32, i32
  }
  func.func @transform_4(%arg0: i32, %arg1: i32) -> (i32, i32) {
    %c0_i32 = arith.constant 0 : i32
    return %arg0, %arg1 : i32, i32
  }
}

</mosaic_0001>

<bundles_post_ra>
// kernel: tpu_custom_call.1
= control target key start
LH: loop header
LB: loop body
LE: loop exit
PB: predicated region body
PF: predicated region fallthrough
CT: control target
= control target key end

     0   :  { %vm99_vm0 = vcmask 392192   ;;  %s484_s0 = inlined_call_operand.vmem [shape: bf16[128,48], index: 0, kind: input, shape index: {}]   ;;  %s485_s1 = inlined_call_operand.vmem [shape: bf16[48,128], index: 1, kind: input, shape index: {}]   ;;  %s486_s2 = inlined_call_operand.vmem [shape: f32[1,128], index: 2, kind: input, shape index: {}]   ;;  %s487_s3 = inlined_call_operand.vmem [shape: f32[1,128], index: 3, kind: input, shape index: {}]   ;;  %s488_s4 = inlined_call_operand.hbm [shape: f32[128,128], index: 4, kind: output, shape index: {}]  }
   0x1   :  { %v362_v0 = vld [vmem:[%s485_s1] sm:$0xff]   ;;  %v363_v1 = vld [vmem:[%s485_s1 + $0x8] sm:$0xff]   ;;  %v364_v2 = vld [vmem:[%s485_s1 + $0x10] sm:$0xff]  }
   0x2   :  { %331 = vmatprep.subr.bf16.mxu0 %v362_v0  ;;  %353 = vmatprep.subr.bf16.mxu1 %v362_v0  ;;  %v365_v3 = vld [vmem:[%s484_s0] sm:$0xff]   ;;  %v367_v5 = vld [vmem:[%s484_s0 + $0x8] sm:$0xff]   ;;  %v369_v7 = vld [vmem:[%s484_s0 + $0x10] sm:$0xff]  }
   0x3   :  { %332 = vmatpush3.bf16.msra.mxu0 %v362_v0  ;;  %356 = vmatpush3.bf16.msra.mxu1 %v362_v0  ;;  %v366_v4 = vld [vmem:[%s484_s0 + $0x20] sm:$0xff]   ;;  %v368_v6 = vld [vmem:[%s484_s0 + $0x28] sm:$0xff]   ;;  %v370_v8 = vld [vmem:[%s484_s0 + $0x30] sm:$0xff]  }
   0x4   :  { %333 = vmatprep.subr.bf16.mxu0 %v363_v1  ;;  %354 = vmatprep.subr.bf16.mxu1 %v363_v1 }
   0x5   :  { %337 = vmatprep.mubr.msk.bf16.mxu0 %vm99_vm0, %v365_v3  ;;  %345 = vmatprep.mubr.msk.bf16.mxu1 %vm99_vm0, %v366_v4 }
   0x7   :  { %334 = vmatpush3.bf16.msra.mxu0 %v363_v1  ;;  %357 = vmatpush3.bf16.msra.mxu1 %v363_v1 }
   0x8   :  { %335 = vmatprep.subr.bf16.mxu0 %v364_v2  ;;  %355 = vmatprep.subr.bf16.mxu1 %v364_v2 }
   0xb   :  { %336 = vmatpush3.bf16.msra.mxu0 %v364_v2  ;;  %358 = vmatpush3.bf16.msra.mxu1 %v364_v2 }
   0xc   :  { %9 = vsyncpa [#allocation3], 0  ;;  %v371_v9 = vld [vmem:[%s484_s0 + $0x18] sm:$0xff]   ;;  %v318_v11 = vld [vmem:[%s486_s2] ss:$0 sm:$0xff] }
   0xd   :  { %v372_v10 = vld [vmem:[%s484_s0 + $0x38] sm:$0xff]   ;;  %v319_v13 = vld [vmem:[%s487_s3] ss:$0 sm:$0xff]  ;;  %s397_s0 = smov [#allocation2]  }
   0xe   :  { %338 = vmatmul.mubr.msk.bf16.vlgmr.msra.gmra.mrb[0].mxu0 %vm99_vm0, %v367_v5  ;;  %346 = vmatmul.mubr.msk.bf16.vlgmr.msra.gmra.mrb[0].mxu1 %vm99_vm0, %v368_v6  ;;  %s288_s2 = sshll.u32 %s397_s0, 4  ;;  %s289_s2 = int_to_ptr.vmem [resolvable:$true] %s288_s2 }
   0xf   :  { %341 = vmatprep.mubr.msk.bf16.mxu0 %vm99_vm0, %v369_v7  ;;  %349 = vmatprep.mubr.msk.bf16.mxu1 %vm99_vm0, %v370_v8  ;;  %s373_s3 = scalar_lea.vmem %s289_s2, 2048  ;;  %p378_p1 = scmp.lt.s32.totalorder %s289_s2, %s289_s2 }
  0x10   :  { %p374_p0 = scmp.ne.s32.totalorder %s289_s2, %s373_s3  ;;  %p379_p2 = scmp.lt.s32.totalorder %s373_s3, %s373_s3 }
  0x12   :  { %p380_p3 = por %p379_p2, %p378_p1 }
  0x14   :  { %p381_p4 = pnand %p380_p3, %p374_p0 }
  0x16   :  { %342 = vmatmul.mubr.msk.bf16.gmra.mrb[4].mxu0 %vm99_vm0, %v371_v9  ;;  %350 = vmatmul.mubr.msk.bf16.gmra.mrb[4].mxu1 %vm99_vm0, %v372_v10 }
  0xe1   :  { %v339_v12 = vpop.f32.mrb[0].mxu0  ;;  %v347_v14 = vpop.f32.mrb[0].mxu1 }
  0xe2   :  { %v230_v15 = vmul.f32 %v339_v12, %v318_v11  ;;  %v238_v16 = vmul.f32 %v347_v14, %v318_v11  ;;  %v158_v17 = vpop.f32.mrb[1].mxu0  ;;  %v190_v18 = vpop.f32.mrb[1].mxu1 }
  0xe3   :  { %v228_v19 = vmul.f32 %v318_v11, %v158_v17  ;;  %v236_v20 = vmul.f32 %v318_v11, %v190_v18  ;;  %v340_v21 = vpop.f32.mrb[2].mxu0  ;;  %v348_v22 = vpop.f32.mrb[2].mxu1 }
  0xe4   :  { %v253_v23 = vadd.f32 %v319_v13, %v230_v15  ;;  %v261_v24 = vadd.f32 %v319_v13, %v238_v16  ;;  %v231_v25 = vmul.f32 %v340_v21, %v318_v11  ;;  %v239_v26 = vmul.f32 %v348_v22, %v318_v11  ;;  %v161_v27 = vpop.f32.mrb[3].mxu0  ;;  %v193_v28 = vpop.f32.mrb[3].mxu1 }
  0xe5   :  { %v251_v29 = vadd.f32 %v319_v13, %v228_v19  ;;  %v259_v30 = vadd.f32 %v319_v13, %v236_v20  ;;  %v229_v31 = vmul.f32 %v318_v11, %v161_v27  ;;  %v237_v32 = vmul.f32 %v318_v11, %v193_v28 }
  0xe6   :  { %269 = vst [vmem:[#allocation2 + $0x10] sm:$0xff] %v253_v23  ;;  %277 = vst [vmem:[#allocation2 + $0x50] sm:$0xff] %v261_v24  ;;  %v254_v33 = vadd.f32 %v319_v13, %v231_v25  ;;  %v262_v34 = vadd.f32 %v319_v13, %v239_v26 }
  0xe7   :  { %267 = vst [vmem:[#allocation2] sm:$0xff] %v251_v29  ;;  %275 = vst [vmem:[#allocation2 + $0x40] sm:$0xff] %v259_v30  ;;  %v252_v35 = vadd.f32 %v319_v13, %v229_v31  ;;  %v260_v36 = vadd.f32 %v319_v13, %v237_v32 }
  0xe8   :  { %270 = vst [vmem:[#allocation2 + $0x18] sm:$0xff] %v254_v33  ;;  %278 = vst [vmem:[#allocation2 + $0x58] sm:$0xff] %v262_v34 }
  0xe9   :  { %268 = vst [vmem:[#allocation2 + $0x8] sm:$0xff] %v252_v35  ;;  %276 = vst [vmem:[#allocation2 + $0x48] sm:$0xff] %v260_v36  ;;  %v343_v37 = vpop.f32.mrb[4].mxu0  ;;  %v351_v38 = vpop.f32.mrb[4].mxu1 }
  0xea   :  { %v234_v39 = vmul.f32 %v343_v37, %v318_v11  ;;  %v242_v40 = vmul.f32 %v351_v38, %v318_v11  ;;  %v174_v41 = vpop.f32.mrb[5].mxu0  ;;  %v206_v42 = vpop.f32.mrb[5].mxu1 }
  0xeb   :  { %v232_v43 = vmul.f32 %v318_v11, %v174_v41  ;;  %v240_v44 = vmul.f32 %v318_v11, %v206_v42  ;;  %v344_v45 = vpop.f32.mrb[6].mxu0  ;;  %v352_v46 = vpop.f32.mrb[6].mxu1 }
  0xec   :  { %v257_v47 = vadd.f32 %v319_v13, %v234_v39  ;;  %v265_v48 = vadd.f32 %v319_v13, %v242_v40  ;;  %v235_v49 = vmul.f32 %v344_v45, %v318_v11  ;;  %v243_v50 = vmul.f32 %v352_v46, %v318_v11  ;;  %v177_v51 = vpop.f32.mrb[7].mxu0  ;;  %v209_v52 = vpop.f32.mrb[7].mxu1 }
  0xed   :  { %v255_v53 = vadd.f32 %v319_v13, %v232_v43  ;;  %v263_v54 = vadd.f32 %v319_v13, %v240_v44  ;;  %v233_v55 = vmul.f32 %v318_v11, %v177_v51  ;;  %v241_v56 = vmul.f32 %v318_v11, %v209_v52 }
  0xee   :  { %273 = vst [vmem:[#allocation2 + $0x30] sm:$0xff] %v257_v47  ;;  %281 = vst [vmem:[#allocation2 + $0x70] sm:$0xff] %v265_v48  ;;  %v258_v57 = vadd.f32 %v319_v13, %v235_v49  ;;  %v266_v58 = vadd.f32 %v319_v13, %v243_v50 }
  0xef   :  { %271 = vst [vmem:[#allocation2 + $0x20] sm:$0xff] %v255_v53  ;;  %279 = vst [vmem:[#allocation2 + $0x60] sm:$0xff] %v263_v54  ;;  %v256_v59 = vadd.f32 %v319_v13, %v233_v55  ;;  %v264_v60 = vadd.f32 %v319_v13, %v241_v56 }
  0xf0   :  { %274 = vst [vmem:[#allocation2 + $0x38] sm:$0xff] %v258_v57  ;;  %282 = vst [vmem:[#allocation2 + $0x78] sm:$0xff] %v266_v58 }
  0xf1   :  { %272 = vst [vmem:[#allocation2 + $0x28] sm:$0xff] %v256_v59  ;;  %280 = vst [vmem:[#allocation2 + $0x68] sm:$0xff] %v264_v60 }
  0xf2   :  { %384 = shalt.err (!%p381_p4)
}
  0xf3   :  { %s385_s16 = scalar_lea.hbm %s488_s4, 2048 }
  0xf4   :  { %p386_p5 = scmp.ne.s32.totalorder %s488_s4, %s385_s16  ;;  %p389_p6 = scmp.lt.u32.totalorder %s385_s16, %s488_s4 }
  0xf6   :  { %p391_p7 = pnand %p389_p6, %p386_p5 }
  0xf8   :  { %394 = shalt.err (!%p391_p7)
}
  0xf9   :  { %s398_s21 = smov 128   ;;  %s399_s22 = smov 8  }
  0xfa   :  { %294 = dma.vmem_to_hbm [thread:$0]  %s289_s2, 2048, %s488_s4, [#allocation3], %s398_s21, %s398_s21, %s399_s22  }
  0xfb   :  { %395 = dma.done.wait [#allocation3], 2048  }
  0xfc   :  { %396 = vsyncadd [#allocation3], 4294965248 }
  0xfd   :  { %298 = vsyncpa [#allocation3], 1 }

</bundles_post_ra>
